<compile_context>
chip_gen: v5e
topology: v5e:2x2
jax: 0.10.0
libtpu: 0.0.40
codegen_flags: <defaults>
</compile_context>

<pallas_src>
import math
import functools

import jax
import jax.numpy as jnp
from jax.experimental import pallas as pl
from jax.experimental.pallas import tpu as pltpu

LANES = 128  # one vreg lane width; all feature groups are packed into it


def _stable_softplus(x):
    # Avoids f32 exp overflow for x >~ 88; the extra select is a free VPU slot.
    return jnp.where(x > 20.0, x, jnp.log1p(jnp.exp(jnp.minimum(x, 20.0))))


# -----------------------------------------------------------------------------
# Fused kernel: SinusoidalPosEmb -> (Linear, Mish, Linear) -> lane-packed concat
# -> 3-layer MLP (ReLU hidden).  x_ref is the packed (TB, 128) activation slab,
# w_ref the (5, 128, 128) bf16 padded-weight slab, b_ref the (5, 128) f32 biases.
# -----------------------------------------------------------------------------
def _actor_kernel(x_ref, w_ref, b_ref, out_ref, *, sin_off, cos_off, half_dim):
    f32 = jnp.float32
    bf16 = jnp.bfloat16

    x = x_ref[...]                                          # (TB, 128) f32

    # --- SinusoidalPosEmb on the lane-packed timestep copies ------------------
    # The slab carries t*freqs twice (at sin_off and cos_off); sin/cos run on
    # the full vreg (cheap EUP) and a static lane mask keeps only those lanes.
    lane = jax.lax.broadcasted_iota(jnp.int32, x.shape, 1)
    sin_all = jnp.sin(x)
    cos_all = jnp.cos(x)
    emb = jnp.where((lane >= sin_off) & (lane < sin_off + half_dim), sin_all,
                    jnp.where((lane >= cos_off) & (lane < cos_off + half_dim),
                              cos_all, 0.0))

    # --- temp_layers: Linear(time_dim, 2*time_dim) -> Mish -> Linear(..., time_dim)
    h = jnp.dot(emb.astype(bf16), w_ref[0],
                preferred_element_type=f32) + b_ref[0:1, :]
    h = h * jnp.tanh(_stable_softplus(h))                   # Mish; zero lanes stay zero
    temb = jnp.dot(h.astype(bf16), w_ref[1],
                   preferred_element_type=f32) + b_ref[1:2, :]
    # temb lands exactly in its reserved lane window; all other lanes are zero.

    # --- MLP on lane-packed concat(obs, noisy_act, temb) ----------------------
    # obs/act already live in x; the timestep lanes hit all-zero weight rows.
    xin = x + temb
    z = jnp.dot(xin.astype(bf16), w_ref[2],
                preferred_element_type=f32) + b_ref[2:3, :]
    z = jnp.maximum(z, 0.0)
    z = jnp.dot(z.astype(bf16), w_ref[3],
                preferred_element_type=f32) + b_ref[3:4, :]
    z = jnp.maximum(z, 0.0)
    out = jnp.dot(z.astype(bf16), w_ref[4],
                  preferred_element_type=f32) + b_ref[4:5, :]
    out_ref[...] = out.astype(out_ref.dtype)                # lane-dense (TB, 128) store


# -----------------------------------------------------------------------------
# Lane layout + slab packing
# -----------------------------------------------------------------------------
def _layout(obs_dim, act_dim, time_dim, hidden_dim):
    half = time_dim // 2
    obs_off = 0
    act_off = obs_dim
    temb_off = obs_dim + act_dim
    sin_off = temb_off + time_dim
    cos_off = sin_off + half
    total = cos_off + half
    assert total <= LANES, "packed feature layout exceeds one 128-lane vreg"
    assert 2 * time_dim <= LANES and hidden_dim <= LANES and act_dim <= LANES
    return dict(half=half, obs_off=obs_off, act_off=act_off,
                temb_off=temb_off, sin_off=sin_off, cos_off=cos_off)


def pack_params(p, obs_dim, act_dim, time_dim, hidden_dim):
    lay = _layout(obs_dim, act_dim, time_dim, hidden_dim)
    half = lay["half"]

    def pad_w(w, r0, c0, buf=None):
        if buf is None:
            buf = jnp.zeros((LANES, LANES), jnp.float32)
        return buf.at[r0:r0 + w.shape[0], c0:c0 + w.shape[1]].set(w)

    # temp Linear(time_dim, 2*time_dim): sin rows / cos rows at their lane slots.
    w0 = pad_w(p["w1"][:half], lay["sin_off"], 0)
    w0 = pad_w(p["w1"][half:], lay["cos_off"], 0, w0)
    # temp Linear(2*time_dim, time_dim): outputs land in the temb lane window.
    w1p = pad_w(p["w2"], 0, lay["temb_off"])
    # mlp Linear(obs+time+act, hidden): rows split to packed lane positions.
    wm1 = p["wm1"]
    w2p = pad_w(wm1[:obs_dim], lay["obs_off"], 0)
    w2p = pad_w(wm1[obs_dim:obs_dim + time_dim], lay["temb_off"], 0, w2p)
    w2p = pad_w(wm1[obs_dim + time_dim:], lay["act_off"], 0, w2p)
    w3p = pad_w(p["wm2"], 0, 0)
    w4p = pad_w(p["wo"], 0, 0)
    w_slab = jnp.stack([w0, w1p, w2p, w3p, w4p]).astype(jnp.bfloat16)

    def pad_b(b, c0):
        return jnp.zeros((LANES,), jnp.float32).at[c0:c0 + b.shape[0]].set(b)

    b_slab = jnp.stack([
        pad_b(p["b1"], 0),
        pad_b(p["b2"], lay["temb_off"]),
        pad_b(p["bm1"], 0),
        pad_b(p["bm2"], 0),
        pad_b(p["bo"], 0),
    ])
    return w_slab, b_slab, lay


def pack_inputs(obs, t, noisy_act, freqs, lay, b_pad):
    B, obs_dim = obs.shape
    act_dim = noisy_act.shape[1]
    half = lay["half"]
    # Precompute sinusoidal argument outside the kernel (single XLA op).
    arg = t.reshape(B, 1).astype(jnp.float32) * freqs[None, :]      # (B, half)
    x = jnp.zeros((b_pad, LANES), jnp.float32)
    x = x.at[:B, lay["obs_off"]:lay["obs_off"] + obs_dim].set(obs)
    x = x.at[:B, lay["act_off"]:lay["act_off"] + act_dim].set(noisy_act)
    x = x.at[:B, lay["sin_off"]:lay["sin_off"] + half].set(arg)
    x = x.at[:B, lay["cos_off"]:lay["cos_off"] + half].set(arg)
    return x


# -----------------------------------------------------------------------------
# Wrapper
# -----------------------------------------------------------------------------
def diffusion_mlp_actor_forward(obs, t, noisy_act, params, *, tile_b=256):
    """obs: (B, obs_dim) f32, t: (B,) timesteps, noisy_act: (B, act_dim) f32."""
    B, obs_dim = obs.shape
    act_dim = noisy_act.shape[1]
    time_dim = params["w1"].shape[0]
    hidden_dim = params["wm2"].shape[0]

    w_slab, b_slab, lay = pack_params(params, obs_dim, act_dim, time_dim, hidden_dim)

    if B <= tile_b:
        tb, b_pad = B, B
    else:
        tb = tile_b                              # multiple of 8 -> valid sublane tile
        b_pad = pl.cdiv(B, tb) * tb
    n_blocks = b_pad // tb

    x = pack_inputs(obs, t, noisy_act, params["freqs"], lay, b_pad)

    kernel = functools.partial(_actor_kernel,
                               sin_off=lay["sin_off"],
                               cos_off=lay["cos_off"],
                               half_dim=lay["half"])

    cost = pl.CostEstimate(
        flops=2 * b_pad * 5 * LANES * LANES,
        transcendentals=5 * b_pad * LANES,
        bytes_accessed=(x.size * 4 + w_slab.size * 2 + b_slab.size * 4
                        + b_pad * LANES * 4),
    )

    out_pad = pl.pallas_call(
        kernel,
        out_shape=jax.ShapeDtypeStruct((b_pad, LANES), jnp.float32),
        grid=(n_blocks,),
        in_specs=[
            pl.BlockSpec((tb, LANES), lambda i: (i, 0)),            # activations: tiled
            pl.BlockSpec((5, LANES, LANES), lambda i: (0, 0, 0)),   # weights: resident
            pl.BlockSpec((5, LANES), lambda i: (0, 0)),             # biases: resident
        ],
        out_specs=pl.BlockSpec((tb, LANES), lambda i: (i, 0)),
        compiler_params=pltpu.CompilerParams(
            dimension_semantics=("parallel",)),
        cost_estimate=cost,
    )(x, w_slab, b_slab)

    return out_pad[:B, :act_dim]


# -----------------------------------------------------------------------------
# Deterministic parameter construction (synthetic init, no checkpoint load).
# -----------------------------------------------------------------------------
def init_params(key, obs_dim, act_dim, time_dim, hidden_dim):
    half = time_dim // 2
    ks = jax.random.split(key, 5)

    def dense(k, fan_in, fan_out):
        # PyTorch nn.Linear default init: U(-1/sqrt(fan_in), 1/sqrt(fan_in))
        bound = 1.0 / math.sqrt(fan_in)
        kw, kb = jax.random.split(k)
        w = jax.random.uniform(kw, (fan_in, fan_out), jnp.float32, -bound, bound)
        b = jax.random.uniform(kb, (fan_out,), jnp.float32, -bound, bound)
        return w, b

    # exp(arange(half) * -log(10000)/(half-1))
    freqs = jnp.exp(jnp.arange(half, dtype=jnp.float32)
                    * (-math.log(10000.0) / (half - 1)))

    w1, b1 = dense(ks[0], time_dim, 2 * time_dim)
    w2, b2 = dense(ks[1], 2 * time_dim, time_dim)
    in_dim = obs_dim + time_dim + act_dim
    wm1, bm1 = dense(ks[2], in_dim, hidden_dim)
    wm2, bm2 = dense(ks[3], hidden_dim, hidden_dim)
    wo, bo = dense(ks[4], hidden_dim, act_dim)

    return dict(freqs=freqs, w1=w1, b1=b1, w2=w2, b2=b2,
                wm1=wm1, bm1=bm1, wm2=wm2, bm2=bm2, wo=wo, bo=bo)


# Pure-JAX reference (mirrors the PyTorch forward for the `t is not None`
# branch, with the same bf16-matmul / f32-accumulate numerics as the kernel).
def reference_forward(obs, t, noisy_act, p):
    bf16, f32 = jnp.bfloat16, jnp.float32

    def mm(a, w):
        return jnp.dot(a.astype(bf16), w.astype(bf16), preferred_element_type=f32)

    arg = t[:, None].astype(f32) * p["freqs"][None, :]
    emb = jnp.concatenate([jnp.sin(arg), jnp.cos(arg)], axis=-1)
    h = mm(emb, p["w1"]) + p["b1"]
    h = h * jnp.tanh(_stable_softplus(h))                 # Mish
    temb = mm(h, p["w2"]) + p["b2"]
    x = jnp.concatenate([obs, temb, noisy_act], axis=-1)
    z = jnp.maximum(mm(x, p["wm1"]) + p["bm1"], 0.0)
    z = jnp.maximum(mm(z, p["wm2"]) + p["bm2"], 0.0)
    return mm(z, p["wo"]) + p["bo"]


if __name__ == "__main__":
    B, OBS_DIM, ACT_DIM, TIME_DIM, HIDDEN = 2, 16, 4, 32, 32

    key = jax.random.PRNGKey(0)
    k_obs, k_act, k_t, k_params = jax.random.split(key, 4)

    obs = jax.random.normal(k_obs, (B, OBS_DIM), jnp.float32)
    noisy_act = jax.random.normal(k_act, (B, ACT_DIM), jnp.float32)
    # diffusion timesteps in [0, diffusion_train_steps), cast to float
    t = jax.random.randint(k_t, (B,), 0, 32).astype(jnp.float32)

    params = init_params(k_params, OBS_DIM, ACT_DIM, TIME_DIM, HIDDEN)

    out = diffusion_mlp_actor_forward(obs, t, noisy_act, params)
    out = jax.block_until_ready(out)

    ref = reference_forward(obs, t, noisy_act, params)
    assert out.shape == (B, ACT_DIM)
    assert jnp.allclose(out, ref, atol=5e-3, rtol=5e-3), "mismatch vs reference"

    print("KERNEL_OK")
</pallas_src>

<mosaic_0001>
module attributes {stable_mosaic.version = 11 : i64} {
  func.func @_actor_kernel(%arg0: i32, %arg1: memref<2x128xf32, #tpu.memory_space<vmem>>, %arg2: memref<5x128x128xbf16, #tpu.memory_space<vmem>>, %arg3: memref<5x128xf32, #tpu.memory_space<vmem>>, %arg4: memref<2x128xf32, #tpu.memory_space<vmem>>) attributes {dimension_semantics = [#tpu.dimension_semantics<parallel>], iteration_bounds = array<i64: 1>, scalar_prefetch = 0 : i64, scratch_operands = 0 : i64, tpu.core_type = #tpu.core_type<tc>, window_params = [{transform_indices = @transform_0, window_bounds = array<i64: 2, 128>}, {pipeline_mode = #tpu.pipeline_mode<synchronous>, transform_indices = @transform_1, window_bounds = array<i64: 5, 128, 128>}, {pipeline_mode = #tpu.pipeline_mode<synchronous>, transform_indices = @transform_2, window_bounds = array<i64: 5, 128>}, {transform_indices = @transform_3, window_bounds = array<i64: 2, 128>}]} {
    %c0 = arith.constant 0 : index
    %c0_0 = arith.constant 0 : index
    %0 = vector.load %arg1[%c0, %c0_0] : memref<2x128xf32, #tpu.memory_space<vmem>>, vector<2x128xf32>
    %1 = tpu.iota {dimensions = array<i32: 1>} : vector<2x128xi32>
    %2 = math.sin %0 : vector<2x128xf32>
    %3 = math.cos %0 : vector<2x128xf32>
    %c52_i32 = arith.constant 52 : i32
    %4 = vector.broadcast %c52_i32 : i32 to vector<2x128xi32>
    %5 = arith.cmpi sge, %1, %4 : vector<2x128xi32>
    %c68_i32 = arith.constant 68 : i32
    %6 = vector.broadcast %c68_i32 : i32 to vector<2x128xi32>
    %7 = arith.cmpi slt, %1, %6 : vector<2x128xi32>
    %8 = arith.andi %5, %7 : vector<2x128xi1>
    %c68_i32_1 = arith.constant 68 : i32
    %9 = vector.broadcast %c68_i32_1 : i32 to vector<2x128xi32>
    %10 = arith.cmpi sge, %1, %9 : vector<2x128xi32>
    %c84_i32 = arith.constant 84 : i32
    %11 = vector.broadcast %c84_i32 : i32 to vector<2x128xi32>
    %12 = arith.cmpi slt, %1, %11 : vector<2x128xi32>
    %13 = arith.andi %10, %12 : vector<2x128xi1>
    %cst = arith.constant 0.000000e+00 : f32
    %14 = vector.broadcast %cst : f32 to vector<2x128xf32>
    %15 = arith.select %13, %3, %14 : vector<2x128xi1>, vector<2x128xf32>
    %16 = arith.select %8, %2, %15 : vector<2x128xi1>, vector<2x128xf32>
    %17 = arith.truncf %16 : vector<2x128xf32> to vector<2x128xbf16>
    %c0_2 = arith.constant 0 : index
    %c0_3 = arith.constant 0 : index
    %c0_4 = arith.constant 0 : index
    %18 = vector.load %arg2[%c0_2, %c0_3, %c0_4] : memref<5x128x128xbf16, #tpu.memory_space<vmem>>, vector<1x128x128xbf16>
    %19 = vector.shape_cast %18 : vector<1x128x128xbf16> to vector<128x128xbf16>
    %cst_5 = arith.constant dense<0.000000e+00> : vector<2x128xf32>
    %20 = tpu.matmul %17, %19, %cst_5 {dimension_numbers = #tpu.dot_dimension_numbers<[1], [0], [0], [1], [0, 0, 1, 1], [], []>} : vector<2x128xbf16>, vector<128x128xbf16>, vector<2x128xf32> -> vector<2x128xf32>
    %c0_6 = arith.constant 0 : index
    %c0_7 = arith.constant 0 : index
    %21 = vector.load %arg3[%c0_6, %c0_7] : memref<5x128xf32, #tpu.memory_space<vmem>>, vector<1x128xf32>
    %22 = vector.broadcast %21 : vector<1x128xf32> to vector<2x128xf32>
    %23 = arith.addf %20, %22 : vector<2x128xf32>
    %cst_8 = arith.constant 2.000000e+01 : f32
    %24 = vector.broadcast %cst_8 : f32 to vector<2x128xf32>
    %25 = arith.cmpf ogt, %23, %24 : vector<2x128xf32>
    %cst_9 = arith.constant 2.000000e+01 : f32
    %26 = vector.broadcast %cst_9 : f32 to vector<2x128xf32>
    %27 = arith.minimumf %23, %26 : vector<2x128xf32>
    %28 = math.exp %27 : vector<2x128xf32>
    %29 = math.log1p %28 : vector<2x128xf32>
    %30 = arith.select %25, %23, %29 : vector<2x128xi1>, vector<2x128xf32>
    %31 = math.tanh %30 : vector<2x128xf32>
    %32 = arith.mulf %23, %31 : vector<2x128xf32>
    %33 = arith.truncf %32 : vector<2x128xf32> to vector<2x128xbf16>
    %c1 = arith.constant 1 : index
    %c0_10 = arith.constant 0 : index
    %c0_11 = arith.constant 0 : index
    %34 = vector.load %arg2[%c1, %c0_10, %c0_11] : memref<5x128x128xbf16, #tpu.memory_space<vmem>>, vector<1x128x128xbf16>
    %35 = vector.shape_cast %34 : vector<1x128x128xbf16> to vector<128x128xbf16>
    %cst_12 = arith.constant dense<0.000000e+00> : vector<2x128xf32>
    %36 = tpu.matmul %33, %35, %cst_12 {dimension_numbers = #tpu.dot_dimension_numbers<[1], [0], [0], [1], [0, 0, 1, 1], [], []>} : vector<2x128xbf16>, vector<128x128xbf16>, vector<2x128xf32> -> vector<2x128xf32>
    %c1_13 = arith.constant 1 : index
    %c0_14 = arith.constant 0 : index
    %37 = vector.load %arg3[%c1_13, %c0_14] : memref<5x128xf32, #tpu.memory_space<vmem>>, vector<1x128xf32>
    %38 = vector.broadcast %37 : vector<1x128xf32> to vector<2x128xf32>
    %39 = arith.addf %36, %38 : vector<2x128xf32>
    %40 = arith.addf %0, %39 : vector<2x128xf32>
    %41 = arith.truncf %40 : vector<2x128xf32> to vector<2x128xbf16>
    %c2 = arith.constant 2 : index
    %c0_15 = arith.constant 0 : index
    %c0_16 = arith.constant 0 : index
    %42 = vector.load %arg2[%c2, %c0_15, %c0_16] : memref<5x128x128xbf16, #tpu.memory_space<vmem>>, vector<1x128x128xbf16>
    %43 = vector.shape_cast %42 : vector<1x128x128xbf16> to vector<128x128xbf16>
    %cst_17 = arith.constant dense<0.000000e+00> : vector<2x128xf32>
    %44 = tpu.matmul %41, %43, %cst_17 {dimension_numbers = #tpu.dot_dimension_numbers<[1], [0], [0], [1], [0, 0, 1, 1], [], []>} : vector<2x128xbf16>, vector<128x128xbf16>, vector<2x128xf32> -> vector<2x128xf32>
    %c2_18 = arith.constant 2 : index
    %c0_19 = arith.constant 0 : index
    %45 = vector.load %arg3[%c2_18, %c0_19] : memref<5x128xf32, #tpu.memory_space<vmem>>, vector<1x128xf32>
    %46 = vector.broadcast %45 : vector<1x128xf32> to vector<2x128xf32>
    %47 = arith.addf %44, %46 : vector<2x128xf32>
    %cst_20 = arith.constant 0.000000e+00 : f32
    %48 = vector.broadcast %cst_20 : f32 to vector<2x128xf32>
    %49 = arith.maximumf %47, %48 : vector<2x128xf32>
    %50 = arith.truncf %49 : vector<2x128xf32> to vector<2x128xbf16>
    %c3 = arith.constant 3 : index
    %c0_21 = arith.constant 0 : index
    %c0_22 = arith.constant 0 : index
    %51 = vector.load %arg2[%c3, %c0_21, %c0_22] : memref<5x128x128xbf16, #tpu.memory_space<vmem>>, vector<1x128x128xbf16>
    %52 = vector.shape_cast %51 : vector<1x128x128xbf16> to vector<128x128xbf16>
    %cst_23 = arith.constant dense<0.000000e+00> : vector<2x128xf32>
    %53 = tpu.matmul %50, %52, %cst_23 {dimension_numbers = #tpu.dot_dimension_numbers<[1], [0], [0], [1], [0, 0, 1, 1], [], []>} : vector<2x128xbf16>, vector<128x128xbf16>, vector<2x128xf32> -> vector<2x128xf32>
    %c3_24 = arith.constant 3 : index
    %c0_25 = arith.constant 0 : index
    %54 = vector.load %arg3[%c3_24, %c0_25] : memref<5x128xf32, #tpu.memory_space<vmem>>, vector<1x128xf32>
    %55 = vector.broadcast %54 : vector<1x128xf32> to vector<2x128xf32>
    %56 = arith.addf %53, %55 : vector<2x128xf32>
    %cst_26 = arith.constant 0.000000e+00 : f32
    %57 = vector.broadcast %cst_26 : f32 to vector<2x128xf32>
    %58 = arith.maximumf %56, %57 : vector<2x128xf32>
    %59 = arith.truncf %58 : vector<2x128xf32> to vector<2x128xbf16>
    %c4 = arith.constant 4 : index
    %c0_27 = arith.constant 0 : index
    %c0_28 = arith.constant 0 : index
    %60 = vector.load %arg2[%c4, %c0_27, %c0_28] : memref<5x128x128xbf16, #tpu.memory_space<vmem>>, vector<1x128x128xbf16>
    %61 = vector.shape_cast %60 : vector<1x128x128xbf16> to vector<128x128xbf16>
    %cst_29 = arith.constant dense<0.000000e+00> : vector<2x128xf32>
    %62 = tpu.matmul %59, %61, %cst_29 {dimension_numbers = #tpu.dot_dimension_numbers<[1], [0], [0], [1], [0, 0, 1, 1], [], []>} : vector<2x128xbf16>, vector<128x128xbf16>, vector<2x128xf32> -> vector<2x128xf32>
    %c4_30 = arith.constant 4 : index
    %c0_31 = arith.constant 0 : index
    %63 = vector.load %arg3[%c4_30, %c0_31] : memref<5x128xf32, #tpu.memory_space<vmem>>, vector<1x128xf32>
    %64 = vector.broadcast %63 : vector<1x128xf32> to vector<2x128xf32>
    %65 = arith.addf %62, %64 : vector<2x128xf32>
    %c0_32 = arith.constant 0 : index
    %c0_33 = arith.constant 0 : index
    %66 = vector.load %arg4[%c0_32, %c0_33] : memref<2x128xf32, #tpu.memory_space<vmem>>, vector<2x128xf32>
    tpu.vector_store %arg4[%c0_32, %c0_33], %65 {strides = array<i32>} : memref<2x128xf32, #tpu.memory_space<vmem>>, vector<2x128xf32>,
    return
  }
  func.func @transform_0(%arg0: i32) -> (i32, i32) {
    %c0_i32 = arith.constant 0 : i32
    %c0_i32_0 = arith.constant 0 : i32
    return %arg0, %c0_i32 : i32, i32
  }
  func.func @transform_1(%arg0: i32) -> (i32, i32, i32) {
    %c0_i32 = arith.constant 0 : i32
    %c0_i32_0 = arith.constant 0 : i32
    %c0_i32_1 = arith.constant 0 : i32
    %c0_i32_2 = arith.constant 0 : i32
    return %c0_i32, %c0_i32_0, %c0_i32_1 : i32, i32, i32
  }
  func.func @transform_2(%arg0: i32) -> (i32, i32) {
    %c0_i32 = arith.constant 0 : i32
    %c0_i32_0 = arith.constant 0 : i32
    %c0_i32_1 = arith.constant 0 : i32
    return %c0_i32, %c0_i32_0 : i32, i32
  }
  func.func @transform_3(%arg0: i32) -> (i32, i32) {
    %c0_i32 = arith.constant 0 : i32
    %c0_i32_0 = arith.constant 0 : i32
    return %arg0, %c0_i32 : i32, i32
  }
}

</mosaic_0001>

<bundles_post_ra>
// kernel: tpu_custom_call.1
= control target key start
LH: loop header
LB: loop body
LE: loop exit
PB: predicated region body
PF: predicated region fallthrough
CT: control target
= control target key end

     0   :  { %8 = vsyncpa [#allocation3], 0  ;;  %s1246_s0 = inlined_call_operand.hbm [shape: f32[2,128], index: 0, kind: input, shape index: {}]   ;;  %s1247_s1 = inlined_call_operand.hbm [shape: bf16[5,128,128], index: 1, kind: input, shape index: {}]   ;;  %s1248_s2 = inlined_call_operand.hbm [shape: f32[5,128], index: 2, kind: input, shape index: {}]   ;;  %s1249_s3 = inlined_call_operand.hbm [shape: f32[2,128], index: 3, kind: output, shape index: {}]  }
   0x1   :  { %9 = vsyncpa [#allocation6], 0  ;;  %s26_s14 = sshll.u32 %s1247_s1, 4  ;;  %s27_s14 = int_to_ptr.hbm [resolvable:$true] %s26_s14 }
   0x2   :  { %10 = vsyncpa [#allocation4], 0  ;;  %s1152_s15 = smov [#allocation5]   ;;  %s16_s19 = sshll.u32 %s1246_s0, 4  ;;  %s17_s19 = int_to_ptr.hbm [resolvable:$true] %s16_s19 }
   0x3   :  { %s28_s16 = sshll.u32 %s1152_s15, 4  ;;  %s1153_s20 = smov 64   ;;  %s29_s16 = int_to_ptr.vmem [resolvable:$true] %s28_s16 }
   0x4   :  { %s1154_s21 = smov 4   ;;  %s1155_s22 = smov [#allocation2]  }
   0x5   :  { %34 = dma.hbm_to_vmem [thread:$0]  %s27_s14, 5120, %s29_s16, [#allocation6], %s1153_s20, %s1153_s20, %s1154_s21  }
   0x6   :  { %s18_s23 = sshll.u32 %s1155_s22, 4  ;;  %s40_s26 = sshll.u32 %s1248_s2, 4  ;;  %s19_s23 = int_to_ptr.vmem [resolvable:$true] %s18_s23  ;;  %s41_s26 = int_to_ptr.hbm [resolvable:$true] %s40_s26 }
   0x7   :  { %21 = dma.hbm_to_vmem [thread:$0]  %s17_s19, 32, %s19_s23, [#allocation3]  }
   0x8   :  { %s1156_s1 = smov [#allocation7]  }
   0x9   :  { %s42_s27 = sshll.u32 %s1156_s1, 4  ;;  %s43_s27 = int_to_ptr.vmem [resolvable:$true] %s42_s27 }
   0xa   :  { %45 = dma.hbm_to_vmem [thread:$0]  %s41_s26, 128, %s43_s27, [#allocation6]  }
   0xb   :  { %1146 = dma.done.wait [#allocation3], 32  }
   0xc   :  { %1147 = vsyncadd [#allocation3], 4294967264 }
   0xd   :  { %1148 = dma.done.wait [#allocation6], 5248  }
   0xe   :  { %1149 = vsyncadd [#allocation6], 4294962048  ;;  %v993_v0 = vld [vmem:[#allocation5 + $0x38] sm:$0xff]  ;;  %v992_v1 = vld [vmem:[#allocation5 + $0x30] sm:$0xff]  ;;  %v1157_v17 = vmov 683565275  }
   0xf   :  { %445 = vmatpush.bf16.msra.mxu0 %v993_v0  ;;  %v1194_v2 = vld [vmem:[#allocation2] sm:$0x3]  ;;  %v991_v5 = vld [vmem:[#allocation5 + $0x28] sm:$0xff]  ;;  %v990_v9 = vld [vmem:[#allocation5 + $0x20] sm:$0xff]  ;;  %v1158_v19 = vmov 2475754826  }
  0x10   :  { %v64_v3 = vand.u32 2139095040, %v1194_v2  ;;  %v61_v6 = vand.u32 2147483647, %v1194_v2  ;;  %v989_v13 = vld [vmem:[#allocation5 + $0x18] sm:$0xff]  ;;  %v1159_v21 = vmov 2131351028  }
  0x11   :  { %v1160_v23 = vmov 2102212464   ;;  %v1161_v25 = vmov 920167782   ;;  %v988_v30 = vld [vmem:[#allocation5 + $0x10] sm:$0xff]  ;;  %v987_v42 = vld [vmem:[#allocation5 + $0x8] sm:$0xff] }
  0x12   :  { %v65_v4 = vshrl.u32 %v64_v3, 23  ;;  %v68_v10 = vand.u32 8388607, %v61_v6  ;;  %v1162_v32 = vmov 1326507024   ;;  %v986_v55 = vld [vmem:[#allocation5] sm:$0xff] }
  0x13   :  { %446 = vmatpush.bf16.msra.mxu0 %v992_v1  ;;  %vm63_vm12 = vcmp.lt.s32.totalorder %v1194_v2, 0  ;;  %vm62_vm13 = vcmp.le.f32.partialorder %v61_v6, 0.7853982  ;;  %s1164_s0 = smov [#allocation8]   ;;  %s809_s30 = sshll.u32 %s1249_s3, 4  ;;  %s810_s30 = int_to_ptr.hbm [resolvable:$true] %s809_s30 }
  0x14   :  { %v820_v7 = vadd.s32 4294967169, %v65_v4  ;;  %v69_v14 = vor.u32 8388608, %v68_v10  ;;  %v1163_v10 = vmov 0   ;;  %s807_s2 = sshll.u32 %s1164_s0, 4  ;;  %s808_s2 = int_to_ptr.vmem [resolvable:$true] %s807_s2 }
  0x16   :  { %v71_v8 = vadd.s32 1, %v820_v7  ;;  %v1203_v34 = vshll.u32 %v69_v14, 8 }
  0x17   :  { %447 = vmatpush.bf16.msra.mxu0 %v991_v5 }
  0x18   :  { %vm72_vm0 = vcmp.gt.s32.totalorder %v71_v8, 0  ;;  %v110_v47 = vand.u32 65535, %v1203_v34  ;;  %v111_v48 = vshrl.u32 %v1203_v34, 16 }
  0x19   :  { %v73_v11 = vsel %vm72_vm0, %v71_v8, 0 }
  0x1a   :  { %v75_v12 = vand.u32 31, %v73_v11  ;;  %v1200_v15 = vshrl.u32 %v73_v11, 5 }
  0x1b   :  { %448 = vmatpush.bf16.msra.mxu0 %v990_v9 }
  0x1c   :  { %v76_v16 = vsub.s32 32, %v75_v12  ;;  %v78_v18 = vshll.u32 %v1157_v17, %v75_v12  ;;  %v81_v20 = vshll.u32 %v1158_v19, %v75_v12  ;;  %v84_v22 = vshll.u32 %v1159_v21, %v75_v12 }
  0x1d   :  { %v87_v24 = vshll.u32 %v1160_v23, %v75_v12  ;;  %v90_v26 = vshll.u32 %v1161_v25, %v75_v12  ;;  %vm93_vm1 = vcmp.lt.s32.totalorder %v1200_v15, 1  ;;  %vm96_vm2 = vcmp.lt.s32.totalorder %v1200_v15, 4 }
  0x1e   :  { %v79_v27 = vshrl.u32 %v1158_v19, %v76_v16  ;;  %v82_v28 = vshrl.u32 %v1159_v21, %v76_v16  ;;  %v85_v29 = vshrl.u32 %v1160_v23, %v76_v16  ;;  %v88_v31 = vshrl.u32 %v1161_v25, %v76_v16 }
  0x1f   :  { %449 = vmatpush.bf16.msra.mxu0 %v989_v13  ;;  %v91_v33 = vshrl.u32 %v1162_v32, %v76_v16  ;;  %vm95_vm3 = vcmp.lt.s32.totalorder %v1200_v15, 3  ;;  %vm94_vm4 = vcmp.lt.s32.totalorder %v1200_v15, 2  ;;  %v77_v56 = vshrl.u32 %v1157_v17, %v76_v16 }
  0x20   :  { %v80_v35 = vor.u32 %v79_v27, %v78_v18  ;;  %v83_v36 = vor.u32 %v82_v28, %v81_v20  ;;  %v86_v37 = vor.u32 %v85_v29, %v84_v22  ;;  %v89_v38 = vor.u32 %v88_v31, %v87_v24 }
  0x21   :  { %v92_v39 = vor.u32 %v91_v33, %v90_v26 }
  0x22   :  { %v101_v40 = vsel %vm93_vm1, %v80_v35, %v83_v36  ;;  %v105_v41 = vsel %vm93_vm1, %v83_v36, %v86_v37  ;;  %v102_v43 = vsel %vm96_vm2, %v89_v38, 920167782  ;;  %v97_v7 = vsel %vm93_vm1, %v77_v56, %v80_v35 }
  0x23   :  { %450 = vmatpush.bf16.msra.mxu0 %v988_v30  ;;  %v106_v44 = vsel %vm96_vm2, %v92_v39, 1326507024  ;;  %v103_v45 = vsel %vm95_vm3, %v86_v37, %v102_v43  ;;  %v98_v9 = vsel %vm96_vm2, %v86_v37, 2102212464 }
  0x24   :  { %v107_v46 = vsel %vm95_vm3, %v89_v38, %v106_v44  ;;  %v104_v49 = vsel %vm94_vm4, %v101_v40, %v103_v45  ;;  %v99_v20 = vsel %vm95_vm3, %v83_v36, %v98_v9 }
  0x25   :  { %v108_v50 = vsel %vm94_vm4, %v105_v41, %v107_v46  ;;  %v134_v53 = vand.u32 65535, %v104_v49  ;;  %v135_v54 = vshrl.u32 %v104_v49, 16  ;;  %v100_v28 = vsel %vm94_vm4, %v97_v7, %v99_v20 }
  0x26   :  { %v112_v51 = vand.u32 65535, %v108_v50  ;;  %v113_v52 = vshrl.u32 %v108_v50, 16  ;;  %v154_v32 = vmul.u32 %v1203_v34, %v100_v28 }
  0x27   :  { %451 = vmatpush.bf16.msra.mxu0 %v987_v42  ;;  %v136_v60 = vmul.u32 %v134_v53, %v110_v47  ;;  %v137_v61 = vmul.u32 %v135_v54, %v110_v47  ;;  %v138_v62 = vmul.u32 %v134_v53, %v111_v48  ;;  %v139_v3 = vmul.u32 %v135_v54, %v111_v48 }
  0x28   :  { %v114_v57 = vmul.u32 %v112_v51, %v110_v47  ;;  %v115_v58 = vmul.u32 %v113_v52, %v110_v47  ;;  %v116_v59 = vmul.u32 %v112_v51, %v111_v48  ;;  %v117_v63 = vmul.u32 %v113_v52, %v111_v48 }
  0x29   :  { %v140_v4 = vshll.u32 %v137_v61, 16  ;;  %v142_v5 = vshll.u32 %v138_v62, 16  ;;  %v141_v18 = vshrl.u32 %v137_v61, 16  ;;  %v143_v24 = vshrl.u32 %v138_v62, 16 }
  0x2a   :  { %v118_v0 = vshll.u32 %v115_v58, 16  ;;  %v120_v1 = vshll.u32 %v116_v59, 16  ;;  %v119_v13 = vshrl.u32 %v115_v58, 16  ;;  %v121_v21 = vshrl.u32 %v116_v59, 16 }
  0x2b   :  { %452 = vmatpush.bf16.msra.mxu0 %v986_v55  ;;  %vm144_vm6 = vc.u32 %v136_v60, %v140_v4  ;;  %v146_v12 = vadd.s32 %v140_v4, %v136_v60 }
  0x2c   :  { %vm122_vm5 = vc.u32 %v114_v57, %v118_v0  ;;  %v124_v8 = vadd.s32 %v118_v0, %v114_v57  ;;  %v145_v16 = vsel %vm144_vm6, 1, %v1163_v10 }
  0x2d   :  { %v123_v11 = vsel %vm122_vm5, 1, %v1163_v10  ;;  %v147_v19 = vadd.s32 %v145_v16, %v139_v3  ;;  %vm148_vm8 = vc.u32 %v146_v12, %v142_v5  ;;  %v150_v27 = vadd.s32 %v146_v12, %v142_v5 }
  0x2e   :  { %v125_v14 = vadd.s32 %v123_v11, %v117_v63  ;;  %vm126_vm7 = vc.u32 %v124_v8, %v120_v1  ;;  %v149_v23 = vsel %vm148_vm8, 1, %v1163_v10  ;;  %v59_v8 = vlaneseq }
  0x2f   :  { %v127_v17 = vsel %vm126_vm7, 1, %v1163_v10  ;;  %v151_v25 = vadd.s32 %v149_v23, %v147_v19  ;;  %vm204_vm8 = vweird.f32 %v1194_v2 }
  0x30   :  { %v129_v22 = vadd.s32 %v127_v17, %v125_v14  ;;  %v60_v14 = vand.u32 127, %v59_v8  ;;  %v1013_v8 = vld [vmem:[#allocation5 + $0xd8] sm:$0xff] }
  0x31   :  { %v152_v29 = vadd.s32 %v151_v25, %v141_v18 }
  0x32   :  { %v130_v26 = vadd.s32 %v129_v22, %v119_v13  ;;  %vm370_vm4 = vcmp.ge.s32.totalorder %v60_v14, 52  ;;  %vm373_vm5 = vcmp.ge.s32.totalorder %v60_v14, 68  ;;  %vm374_vm6 = vcmp.lt.s32.totalorder %v60_v14, 84 }
  0x33   :  { %v153_v31 = vadd.s32 %v152_v29, %v143_v24  ;;  %vm371_vm7 = vcmp.lt.s32.totalorder %v60_v14, 68 }
  0x34   :  { %v131_v30 = vadd.s32 %v130_v26, %v121_v21 }
  0x35   :  { %v157_v33 = vadd.s32 1, %v153_v31 }
  0x36   :  { %vm156_vm9 = vc.u32 %v131_v30, %v150_v27  ;;  %v155_v15 = vadd.s32 %v150_v27, %v131_v30 }
  0x37   :  { %v158_v35 = vsel %vm156_vm9, %v157_v33, %v153_v31  ;;  %vm375_vm9 = vmand %vm373_vm5, %vm374_vm6  ;;  %v1000_v33 = vld [vmem:[#allocation5 + $0x70] sm:$0xff] }
  0x38   :  { %v159_v37 = vadd.s32 %v158_v35, %v154_v32  ;;  %v1001_v32 = vld [vmem:[#allocation5 + $0x78] sm:$0xff]  ;;  %v999_v35 = vld [vmem:[#allocation5 + $0x68] sm:$0xff] }
  0x39   :  { %542 = vmatpush.bf16.msra.mxu1 %v1001_v32 }
  0x3a   :  { %v160_v36 = vadd.s32 536870912, %v159_v37 }
  0x3c   :  { %v161_v38 = vshrl.u32 %v160_v36, 30  ;;  %v997_v36 = vld [vmem:[#allocation5 + $0x58] sm:$0xff] }
  0x3d   :  { %543 = vmatpush.bf16.msra.mxu1 %v1000_v33 }
  0x3e   :  { %v162_v39 = vshll.u32 %v161_v38, 30  ;;  %v185_v56 = vsub.s32 4, %v161_v38 }
  0x40   :  { %v163_v40 = vsub.s32 %v159_v37, %v162_v39  ;;  %v186_v59 = vsel %vm63_vm12, %v185_v56, %v161_v38  ;;  %v998_v37 = vld [vmem:[#allocation5 + $0x60] sm:$0xff]  ;;  %v996_v38 = vld [vmem:[#allocation5 + $0x50] sm:$0xff]  ;;  %v995_v39 = vld [vmem:[#allocation5 + $0x48] sm:$0xff] }
  0x41   :  { %v188_v62 = vsel %vm62_vm13, 0, %v186_v59  ;;  %544 = vmatpush.bf16.msra.mxu1 %v999_v35 }
  0x42   :  { %vm164_vm10 = vcmp.lt.s32.totalorder %v163_v40, 0  ;;  %v165_v41 = vsub.s32 0, %v163_v40  ;;  %v205_v4 = vadd.s32 3, %v188_v62  ;;  %v360_v12 = vand.u32 3, %v188_v62 }
  0x44   :  { %v166_v42 = vsel %vm164_vm10, %v165_v41, %v163_v40  ;;  %v206_v11 = vand.u32 3, %v205_v4  ;;  %vm362_vm15 = vcmp.eq.s32.totalorder %v360_v12, 0  ;;  %vm365_vm0 = vcmp.eq.s32.totalorder %v360_v12, 2  ;;  %vm372_vm10 = vmand %vm370_vm4, %vm371_vm7  ;;  %v994_v41 = vld [vmem:[#allocation5 + $0x40] sm:$0xff]  ;;  %v1016_v4 = vld [vmem:[#allocation5 + $0xf0] sm:$0xff] }
  0x45   :  { %v167_v43 = vclz %v166_v42  ;;  %vm361_vm3 = vcmp.lt.s32.totalorder %v360_v12, 2  ;;  %545 = vmatpush.bf16.msra.mxu1 %v998_v37 }
  0x46   :  { %vm211_vm14 = vcmp.eq.s32.totalorder %v206_v11, 2  ;;  %vm207_vm1 = vcmp.lt.s32.totalorder %v206_v11, 2  ;;  %vm208_vm2 = vcmp.eq.s32.totalorder %v206_v11, 0 }
  0x47   :  { %v821_v44 = vadd.s32 4294967294, %v167_v43 }
  0x49   :  { %vm822_vm11 = vcmp.lt.s32.totalorder %v821_v44, 0  ;;  %546 = vmatpush.bf16.msra.mxu1 %v997_v36 }
  0x4a   :  { %v170_v45 = vsel %vm822_vm11, 0, %v821_v44 }
  0x4b   :  { %v171_v46 = vsub.s32 32, %v170_v45  ;;  %v172_v47 = vshll.u32 %v163_v40, %v170_v45  ;;  %v175_v48 = vsub.s32 4294967266, %v170_v45  ;;  %v1039_v40 = vld [vmem:[#allocation7] ss:$0 sm:$0xff]  ;;  %v1009_v45 = vld [vmem:[#allocation5 + $0xb8] sm:$0xff] }
  0x4c   :  { %624 = vmatpush.bf16.msra.mxu2 %v1009_v45 }
  0x4d   :  { %v173_v34 = vshrl.u32 %v155_v15, %v171_v46  ;;  %v176_v49 = vadd.s32 127, %v175_v48  ;;  %547 = vmatpush.bf16.msra.mxu1 %v996_v38  ;;  %v1007_v48 = vld [vmem:[#allocation5 + $0xa8] sm:$0xff]  ;;  %v1043_v38 = vld [vmem:[#allocation7 + $0x4] ss:$0 sm:$0xff] }
  0x4f   :  { %v174_v50 = vor.u32 %v173_v34, %v172_v47  ;;  %v177_v51 = vshll.u32 %v176_v49, 23  ;;  %v1008_v47 = vld [vmem:[#allocation5 + $0xb0] sm:$0xff] }
  0x50   :  { %625 = vmatpush.bf16.msra.mxu2 %v1008_v47 }
  0x51   :  { %v178_v52 = vor.u32 4788187, %v177_v51  ;;  %v181_v53 = vcvt.s32.f32 %v174_v50  ;;  %548 = vmatpush.bf16.msra.mxu1 %v995_v39  ;;  %v1006_v51 = vld [vmem:[#allocation5 + $0xa0] sm:$0xff] }
  0x53   :  { %v179_v54 = vand.u32 2147483647, %v178_v52 }
  0x54   :  { %626 = vmatpush.bf16.msra.mxu2 %v1007_v48 }
  0x55   :  { %v182_v55 = vmul.f32 %v181_v53, %v179_v54  ;;  %549 = vmatpush.bf16.msra.mxu1 %v994_v41  ;;  %v1005_v54 = vld [vmem:[#allocation5 + $0x98] sm:$0xff] }
  0x57   :  { %v183_v57 = vxor.u32 2147483648, %v182_v55 }
  0x58   :  { %627 = vmatpush.bf16.msra.mxu2 %v1006_v51 }
  0x59   :  { %v184_v58 = vsel %vm63_vm12, %v183_v57, %v182_v55 }
  0x5a   :  { %v187_v60 = vsel %vm62_vm13, %v1194_v2, %v184_v58  ;;  %v1004_v58 = vld [vmem:[#allocation5 + $0x90] sm:$0xff] }
  0x5b   :  { %v189_v61 = vmul.f32 %v187_v60, %v187_v60 }
  0x5c   :  { %628 = vmatpush.bf16.msra.mxu2 %v1005_v54 }
  0x5d   :  { %v190_v63 = vmul.f32 -0.001358992, %v189_v61  ;;  %v197_v0 = vmul.f32 -0.00019511016, %v189_v61 }
  0x5f   :  { %v191_v1 = vadd.f32 0.041655596, %v190_v63  ;;  %v198_v3 = vadd.f32 0.008332121, %v197_v0  ;;  %v1003_v0 = vld [vmem:[#allocation5 + $0x88] sm:$0xff] }
  0x60   :  { %629 = vmatpush.bf16.msra.mxu2 %v1004_v58 }
  0x61   :  { %v192_v5 = vmul.f32 %v191_v1, %v189_v61  ;;  %v199_v7 = vmul.f32 %v198_v3, %v189_v61  ;;  %v1002_v1 = vld [vmem:[#allocation5 + $0x80] sm:$0xff]  ;;  %v1017_v3 = vld [vmem:[#allocation5 + $0xf8] sm:$0xff] }
  0x62   :  { %706 = vmatpush.bf16.msra.mxu3 %v1017_v3 }
  0x63   :  { %v193_v9 = vadd.f32 -0.4999988, %v192_v5  ;;  %v200_v10 = vadd.f32 -0.16666654, %v199_v7  ;;  %v1015_v5 = vld [vmem:[#allocation5 + $0xe8] sm:$0xff]  ;;  %v1014_v7 = vld [vmem:[#allocation5 + $0xe0] sm:$0xff] }
  0x64   :  { %630 = vmatpush.bf16.msra.mxu2 %v1003_v0 }
  0x65   :  { %v194_v6 = vmul.f32 %v193_v9, %v189_v61  ;;  %v201_v13 = vmul.f32 %v200_v10, %v189_v61  ;;  %v1012_v9 = vld [vmem:[#allocation5 + $0xd0] sm:$0xff]  ;;  %v1040_v10 = vld [vmem:[#allocation7 + $0x1] ss:$0 sm:$0xff] }
  0x66   :  { %707 = vmatpush.bf16.msra.mxu3 %v1016_v4 }
  0x67   :  { %v195_v16 = vadd.f32 1.0, %v194_v6  ;;  %v202_v17 = vadd.f32 1.0, %v201_v13 }
  0x68   :  { %631 = vmatpush.bf16.msra.mxu2 %v1002_v1 }
  0x69   :  { %v203_v18 = vmul.f32 %v202_v17, %v187_v60  ;;  %v212_v19 = vxor.u32 2147483648, %v195_v16  ;;  %v1010_v17 = vld [vmem:[#allocation5 + $0xc0] sm:$0xff] }
  0x6a   :  { %708 = vmatpush.bf16.msra.mxu3 %v1015_v5 }
  0x6b   :  { %v209_v20 = vxor.u32 2147483648, %v203_v18  ;;  %v213_v21 = vsel %vm211_vm14, %v212_v19, %v203_v18  ;;  %v367_v22 = vsel %vm365_vm0, %v212_v19, %v203_v18  ;;  %v1025_v18 = vld [vmem:[#allocation5 + $0x138] sm:$0xff]  ;;  %v1024_v19 = vld [vmem:[#allocation5 + $0x130] sm:$0xff] }
  0x6c   :  { %788 = vmatpush.bf16.msrb.mxu0 %v1025_v18 }
  0x6d   :  { %v210_v23 = vsel %vm208_vm2, %v195_v16, %v209_v20  ;;  %v364_v24 = vsel %vm362_vm15, %v195_v16, %v209_v20  ;;  %v1011_v16 = vld [vmem:[#allocation5 + $0xc8] sm:$0xff] }
  0x6e   :  { %v214_v25 = vsel %vm207_vm1, %v210_v23, %v213_v21  ;;  %v368_v26 = vsel %vm361_vm3, %v364_v24, %v367_v22  ;;  %709 = vmatpush.bf16.msra.mxu3 %v1014_v7  ;;  %v1023_v20 = vld [vmem:[#allocation5 + $0x128] sm:$0xff]  ;;  %v1022_v21 = vld [vmem:[#allocation5 + $0x120] sm:$0xff]  ;;  %v1021_v22 = vld [vmem:[#allocation5 + $0x118] sm:$0xff] }
  0x6f   :  { %v215_v27 = vsel %vm204_vm8, nan, %v214_v25  ;;  %v369_v28 = vsel %vm204_vm8, nan, %v368_v26  ;;  %v1020_v23 = vld [vmem:[#allocation5 + $0x110] sm:$0xff]  ;;  %v1041_v24 = vld [vmem:[#allocation7 + $0x2] ss:$0 sm:$0xff] }
  0x70   :  { %v376_v29 = vsel %vm375_vm9, %v369_v28, 0.0  ;;  %789 = vmatpush.bf16.msrb.mxu0 %v1024_v19 }
  0x71   :  { %v377_v30 = vsel %vm372_vm10, %v215_v27, %v376_v29  ;;  %v1019_v29 = vld [vmem:[#allocation5 + $0x108] sm:$0xff] }
  0x72   :  { %v378_v31 = vpack.c.bf16 %v377_v30, %v377_v30  ;;  %710 = vmatpush.bf16.msra.mxu3 %v1013_v8  ;;  %v1018_v30 = vld [vmem:[#allocation5 + $0x100] sm:$0xff] }
  0x74   :  { %453 = vmatmul.bf16.vlgmr.msra.gmra.mxu0 %v378_v31  ;;  %v1042_v31 = vld [vmem:[#allocation7 + $0x3] ss:$0 sm:$0xff] }
  0x75   :  { %790 = vmatpush.bf16.msrb.mxu0 %v1023_v20 }
  0x76   :  { %711 = vmatpush.bf16.msra.mxu3 %v1012_v9 }
  0x79   :  { %791 = vmatpush.bf16.msrb.mxu0 %v1022_v21 }
  0x7a   :  { %712 = vmatpush.bf16.msra.mxu3 %v1011_v16 }
  0x7d   :  { %792 = vmatpush.bf16.msrb.mxu0 %v1021_v22 }
  0x7e   :  { %713 = vmatpush.bf16.msra.mxu3 %v1010_v17 }
  0x81   :  { %793 = vmatpush.bf16.msrb.mxu0 %v1020_v23 }
  0x85   :  { %794 = vmatpush.bf16.msrb.mxu0 %v1019_v29 }
  0x89   :  { %795 = vmatpush.bf16.msrb.mxu0 %v1018_v30 }
  0xf1   :  { %v454_v42 = vpop.f32.mrf.mxu0 }
  0xf2   :  { %v455_v43 = vadd.f32 %v1039_v40, %v454_v42 }
  0xf4   :  { %v459_v44 = vmin.f32 %v455_v43, 20.0  ;;  %vm458_vm12 = vcmp.gt.f32.partialorder %v455_v43, 20.0 }
  0xf6   :  { %v460_v15 = vmul.f32 1.442695, %v459_v44 }
  0xf8   :  { %1044 = vpow2.f32 %v460_v15 }
  0xf9   :  { %v456_v46 = vpop.f32.mrf.mxu0 }
  0xfe   :  { %v1045_v34 = vpop.eup %1044 }
  0xff   :  { %v462_v49 = vadd.f32 1.0, %v1045_v34  ;;  %v465_v50 = vmul.f32 -0.5, %v1045_v34  ;;  %v468_v53 = vand.u32 2147483647, %v1045_v34 }
 0x101   :  { %1046 = vlog2.f32 %v462_v49  ;;  %v466_v52 = vadd.f32 1.0, %v465_v50  ;;  %vm469_vm11 = vcmp.lt.f32.partialorder %v468_v53, 0.0004427343 }
 0x103   :  { %v467_v57 = vmul.f32 %v1045_v34, %v466_v52 }
 0x107   :  { %v1047_v55 = vpop.eup %1046 }
 0x108   :  { %v464_v56 = vmul.f32 0.6931472, %v1047_v55 }
 0x10a   :  { %v470_v59 = vsel %vm469_vm11, %v467_v57, %v464_v56 }
 0x10b   :  { %v471_v60 = vsel %vm458_vm12, %v455_v43, %v470_v59 }
 0x10c   :  { %1048 = vtanh.f32 %v471_v60 }
 0x112   :  { %v1049_v61 = vpop.eup %1048 }
 0x113   :  { %v473_v62 = vmul.f32 %v1049_v61, %v455_v43 }
 0x115   :  { %v474_v63 = vpack.c.bf16 %v473_v62, %v473_v62 }
 0x117   :  { %550 = vmatmul.bf16.vlgmr.msra.gmra.mxu1 %v474_v63 }
 0x194   :  { %v551_v11 = vpop.f32.mrf.mxu1 }
 0x195   :  { %v552_v12 = vadd.f32 %v1040_v10, %v551_v11 }
 0x197   :  { %v555_v6 = vadd.f32 %v552_v12, %v1194_v2 }
 0x199   :  { %v556_v13 = vpack.c.bf16 %v555_v6, %v555_v6 }
 0x19b   :  { %632 = vmatmul.bf16.vlgmr.msra.gmra.mxu2 %v556_v13 }
 0x19c   :  { %v553_v14 = vpop.f32.mrf.mxu1 }
 0x21e   :  { %v633_v2 = vpop.f32.mrf.mxu2 }
 0x21f   :  { %v634_v25 = vadd.f32 %v1041_v24, %v633_v2 }
 0x221   :  { %v637_v26 = vmax.f32 %v634_v25, 0.0 }
 0x223   :  { %v638_v27 = vpack.c.bf16 %v637_v26, %v637_v26 }
 0x225   :  { %714 = vmatmul.bf16.vlgmr.msra.gmra.mxu3 %v638_v27 }
 0x226   :  { %v635_v28 = vpop.f32.mrf.mxu2 }
 0x2a8   :  { %v715_v32 = vpop.f32.mrf.mxu3 }
 0x2a9   :  { %v716_v33 = vadd.f32 %v1042_v31, %v715_v32 }
 0x2ab   :  { %v719_v35 = vmax.f32 %v716_v33, 0.0 }
 0x2ad   :  { %v720_v37 = vpack.c.bf16 %v719_v35, %v719_v35 }
 0x2af   :  { %796 = vmatmul.bf16.vlgmr.msrb.gmra.mxu0 %v720_v37 }
 0x2b0   :  { %v717_v36 = vpop.f32.mrf.mxu3 }
 0x32c   :  { %v797_v39 = vpop.f32.mrf.mxu0 }
 0x32d   :  { %v798_v40 = vadd.f32 %v1043_v38, %v797_v39 }
 0x32f   :  { %801 = vst [vmem:[#allocation8] sm:$0x3] %v798_v40 }
 0x330   :  { %812 = dma.vmem_to_hbm [thread:$0]  %s808_s2, 32, %s810_s30, [#allocation4]  }
 0x334   :  { %v799_v41 = vpop.f32.mrf.mxu0 }
 0x335   :  { %1150 = dma.done.wait [#allocation4], 32  }
 0x336   :  { %1151 = vsyncadd [#allocation4], 4294967264 }
 0x337   :  { %817 = vsyncpa [#allocation3], 1 }
 0x338   :  { %818 = vsyncpa [#allocation6], 1 }
 0x339   :  { %819 = vsyncpa [#allocation4], 1 }

</bundles_post_ra>
